<compile_context>
chip_gen: v6e
topology: v6e:2x2x1
jax: 0.10.0
libtpu: 0.0.40
codegen_flags: <defaults>
</compile_context>

<pallas_src>
import functools

import jax
import jax.numpy as jnp
from jax import lax
from jax.experimental import pallas as pl
from jax.experimental.pallas import tpu as pltpu


def _round_up(x, m):
    return ((x + m - 1) // m) * m


def _label_smoothing_kernel(pred_ref, tgt_ref, out_ref, *,
                            confidence, fill, num_classes, n_rows,
                            col_masked, row_masked):
    i = pl.program_id(0)

    pred = pred_ref[...].astype(jnp.float32)           # (TILE_N, C_pad)
    tn, cp = pred.shape

    col_ids = lax.broadcasted_iota(jnp.int32, (tn, cp), 1)

    # --- masked row max / log-sum-exp over real classes only ---
    if col_masked:
        col_valid = col_ids < num_classes
        neg_big = jnp.float32(-1e30)
        pred_m = jnp.where(col_valid, pred, neg_big)
        sum_pred = jnp.sum(jnp.where(col_valid, pred, 0.0),
                           axis=-1, keepdims=True)      # (TILE_N, 1)
    else:
        pred_m = pred
        sum_pred = jnp.sum(pred, axis=-1, keepdims=True)

    row_max = jnp.max(pred_m, axis=-1, keepdims=True)   # (TILE_N, 1)
    sum_exp = jnp.sum(jnp.exp(pred_m - row_max), axis=-1, keepdims=True)
    lse = jnp.log(sum_exp)                               # (TILE_N, 1)

    # --- pred at the target class via iota-compare (scatter/gather-free) ---
    tgt = tgt_ref[...]                                   # (TILE_N, 1) int32
    pred_tgt = jnp.sum(jnp.where(col_ids == tgt, pred, 0.0),
                       axis=-1, keepdims=True)           # (TILE_N, 1)

    c_f = jnp.float32(num_classes)
    sum_logp = sum_pred - c_f * (row_max + lse)          # sum_j logp_j
    logp_tgt = pred_tgt - row_max - lse                  # logp at target

    per_row = -(jnp.float32(fill) * sum_logp
                + jnp.float32(confidence - fill) * logp_tgt)  # (TILE_N, 1)

    if row_masked:
        row_ids = i * tn + lax.broadcasted_iota(jnp.int32, (tn, 1), 0)
        per_row = jnp.where(row_ids < n_rows, per_row, 0.0)

    out_ref[...] = per_row


def label_smoothing_loss(pred, target, *, classes, smoothing=0.1,
                         block_rows=None):
    """pred: (N, C) float32/bfloat16 logits; target: (N,) int class ids.

    Returns the scalar label-smoothing loss (float32).
    """
    n, c = pred.shape
    assert c == classes
    confidence = 1.0 - smoothing
    fill = smoothing / (classes - 1)

    itemsize = jnp.dtype(pred.dtype).itemsize
    c_pad = _round_up(c, 128)                            # lane-dense class axis

    if block_rows is None:
        # Largest convenient row tile, capped so a double-buffered pred tile
        # stays well inside every generation's default scoped VMEM
        # (~4 MiB per buffer -> 8 MiB double-buffered, fits v5e's 16 MiB).
        max_rows_by_vmem = max(8, ((4 << 20) // (c_pad * itemsize)) // 8 * 8)
        block_rows = min(512, _round_up(n, 8), max_rows_by_vmem)
    block_rows = max(8, _round_up(block_rows, 8))

    n_tiles = -(-n // block_rows)
    n_pad = n_tiles * block_rows

    pred_p = pred
    if (n_pad != n) or (c_pad != c):
        pred_p = jnp.pad(pred, ((0, n_pad - n), (0, c_pad - c)))
    tgt2d = target.astype(jnp.int32).reshape(n, 1)
    if n_pad != n:
        tgt2d = jnp.pad(tgt2d, ((0, n_pad - n), (0, 0)))

    kernel = functools.partial(
        _label_smoothing_kernel,
        confidence=confidence,
        fill=fill,
        num_classes=classes,
        n_rows=n,
        col_masked=(c_pad != c),
        row_masked=(n_pad != n),
    )

    per_row = pl.pallas_call(
        kernel,
        out_shape=jax.ShapeDtypeStruct((n_pad, 1), jnp.float32),
        grid_spec=pltpu.PrefetchScalarGridSpec(
            num_scalar_prefetch=0,
            grid=(n_tiles,),
            in_specs=[
                pl.BlockSpec((block_rows, c_pad), lambda i: (i, 0)),
                pl.BlockSpec((block_rows, 1), lambda i: (i, 0)),
            ],
            out_specs=pl.BlockSpec((block_rows, 1), lambda i: (i, 0)),
        ),
        compiler_params=pltpu.CompilerParams(
            # Independent row tiles -> both TensorCores on v7x; harmless on
            # single-core v5e/v6e.
            dimension_semantics=("parallel",),
        ),
    )(pred_p, tgt2d)

    # Tiny final reduction (n_pad scalars) done in the wrapper; padded rows
    # were zeroed in-kernel, so divide by the true N.
    return jnp.sum(per_row) / jnp.float32(n)


def _reference(pred, target, classes, smoothing=0.1):
    confidence = 1.0 - smoothing
    logp = jax.nn.log_softmax(pred.astype(jnp.float32), axis=-1)
    true_dist = jnp.full_like(logp, smoothing / (classes - 1))
    true_dist = true_dist.at[jnp.arange(pred.shape[0]), target].set(confidence)
    return jnp.mean(jnp.sum(-true_dist * logp, axis=-1))


if __name__ == "__main__":
    key = jax.random.PRNGKey(0)
    k1, k2 = jax.random.split(key)

    # Small shapes, chosen to exercise row tiling (3 grid steps), class-axis
    # padding (32 -> 128 lanes) and partial-last-tile row masking (40 -> 48).
    N, C = 40, 32
    pred = jax.random.normal(k1, (N, C), dtype=jnp.float32)
    target = jax.random.randint(k2, (N,), 0, C, dtype=jnp.int32)

    loss = label_smoothing_loss(pred, target, classes=C, smoothing=0.1,
                                block_rows=16)
    loss = jax.block_until_ready(loss)

    ref = _reference(pred, target, C, smoothing=0.1)
    assert jnp.allclose(loss, ref, atol=1e-5, rtol=1e-4), (loss, ref)

    print("KERNEL_OK")
</pallas_src>

<mosaic_0001>
module attributes {stable_mosaic.version = 11 : i64} {
  func.func @_label_smoothing_kernel(%arg0: i32, %arg1: memref<16x128xf32, #tpu.memory_space<vmem>>, %arg2: memref<16x1xi32, #tpu.memory_space<vmem>>, %arg3: memref<16x1xf32, #tpu.memory_space<vmem>>) attributes {dimension_semantics = [#tpu.dimension_semantics<parallel>], iteration_bounds = array<i64: 3>, scalar_prefetch = 0 : i64, scratch_operands = 0 : i64, tpu.core_type = #tpu.core_type<tc>, window_params = [{transform_indices = @transform_0, window_bounds = array<i64: 16, 128>}, {transform_indices = @transform_1, window_bounds = array<i64: 16, 1>}, {transform_indices = @transform_2, window_bounds = array<i64: 16, 1>}]} {
    %c0 = arith.constant 0 : index
    %c0_0 = arith.constant 0 : index
    %0 = vector.load %arg1[%c0, %c0_0] : memref<16x128xf32, #tpu.memory_space<vmem>>, vector<16x128xf32>
    %1 = tpu.iota {dimensions = array<i32: 1>} : vector<16x128xi32>
    %c32_i32 = arith.constant 32 : i32
    %2 = vector.broadcast %c32_i32 : i32 to vector<16x128xi32>
    %3 = arith.cmpi slt, %1, %2 : vector<16x128xi32>
    %cst = arith.constant -1.000000e+30 : f32
    %4 = vector.broadcast %cst : f32 to vector<16x128xf32>
    %5 = arith.select %3, %0, %4 : vector<16x128xi1>, vector<16x128xf32>
    %cst_1 = arith.constant 0.000000e+00 : f32
    %6 = vector.broadcast %cst_1 : f32 to vector<16x128xf32>
    %7 = arith.select %3, %0, %6 : vector<16x128xi1>, vector<16x128xf32>
    %cst_2 = arith.constant dense<0.000000e+00> : vector<16xf32>
    %8 = vector.multi_reduction <add>, %7, %cst_2 [1] : vector<16x128xf32> to vector<16xf32>
    %9 = vector.shape_cast %8 : vector<16xf32> to vector<16x1xf32>
    %cst_3 = arith.constant dense<0xFF800000> : vector<16xf32>
    %10 = vector.multi_reduction <maximumf>, %5, %cst_3 [1] : vector<16x128xf32> to vector<16xf32>
    %11 = vector.shape_cast %10 : vector<16xf32> to vector<16x1xf32>
    %12 = vector.broadcast %11 : vector<16x1xf32> to vector<16x128xf32>
    %13 = arith.subf %5, %12 : vector<16x128xf32>
    %14 = math.exp %13 : vector<16x128xf32>
    %cst_4 = arith.constant dense<0.000000e+00> : vector<16xf32>
    %15 = vector.multi_reduction <add>, %14, %cst_4 [1] : vector<16x128xf32> to vector<16xf32>
    %16 = vector.shape_cast %15 : vector<16xf32> to vector<16x1xf32>
    %17 = math.log %16 : vector<16x1xf32>
    %c0_5 = arith.constant 0 : index
    %c0_6 = arith.constant 0 : index
    %18 = vector.load %arg2[%c0_5, %c0_6] : memref<16x1xi32, #tpu.memory_space<vmem>>, vector<16x1xi32>
    %19 = vector.broadcast %18 : vector<16x1xi32> to vector<16x128xi32>
    %20 = arith.cmpi eq, %1, %19 : vector<16x128xi32>
    %cst_7 = arith.constant 0.000000e+00 : f32
    %21 = vector.broadcast %cst_7 : f32 to vector<16x128xf32>
    %22 = arith.select %20, %0, %21 : vector<16x128xi1>, vector<16x128xf32>
    %cst_8 = arith.constant dense<0.000000e+00> : vector<16xf32>
    %23 = vector.multi_reduction <add>, %22, %cst_8 [1] : vector<16x128xf32> to vector<16xf32>
    %24 = vector.shape_cast %23 : vector<16xf32> to vector<16x1xf32>
    %25 = arith.addf %11, %17 : vector<16x1xf32>
    %cst_9 = arith.constant 3.200000e+01 : f32
    %26 = vector.broadcast %cst_9 : f32 to vector<16x1xf32>
    %27 = arith.mulf %26, %25 : vector<16x1xf32>
    %28 = arith.subf %9, %27 : vector<16x1xf32>
    %29 = arith.subf %24, %11 : vector<16x1xf32>
    %30 = arith.subf %29, %17 : vector<16x1xf32>
    %cst_10 = arith.constant 0.0032258064 : f32
    %31 = vector.broadcast %cst_10 : f32 to vector<16x1xf32>
    %32 = arith.mulf %31, %28 : vector<16x1xf32>
    %cst_11 = arith.constant 0.896774172 : f32
    %33 = vector.broadcast %cst_11 : f32 to vector<16x1xf32>
    %34 = arith.mulf %33, %30 : vector<16x1xf32>
    %35 = arith.addf %32, %34 : vector<16x1xf32>
    %cst_12 = arith.constant 0.000000e+00 : f32
    %36 = vector.broadcast %cst_12 : f32 to vector<16x1xf32>
    %37 = arith.subf %36, %35 : vector<16x1xf32>
    %c16_i32 = arith.constant 16 : i32
    %38 = arith.muli %arg0, %c16_i32 : i32
    %39 = tpu.iota {dimensions = array<i32: 0>} : vector<16x1xi32>
    %40 = vector.broadcast %38 : i32 to vector<16x1xi32>
    %41 = arith.addi %40, %39 : vector<16x1xi32>
    %c40_i32 = arith.constant 40 : i32
    %42 = vector.broadcast %c40_i32 : i32 to vector<16x1xi32>
    %43 = arith.cmpi slt, %41, %42 : vector<16x1xi32>
    %cst_13 = arith.constant 0.000000e+00 : f32
    %44 = vector.broadcast %cst_13 : f32 to vector<16x1xf32>
    %45 = arith.select %43, %37, %44 : vector<16x1xi1>, vector<16x1xf32>
    %c0_14 = arith.constant 0 : index
    %c0_15 = arith.constant 0 : index
    %46 = vector.load %arg3[%c0_14, %c0_15] : memref<16x1xf32, #tpu.memory_space<vmem>>, vector<16x1xf32>
    tpu.vector_store %arg3[%c0_14, %c0_15], %45 {strides = array<i32>} : memref<16x1xf32, #tpu.memory_space<vmem>>, vector<16x1xf32>,
    return
  }
  func.func @transform_0(%arg0: i32) -> (i32, i32) {
    %c0_i32 = arith.constant 0 : i32
    %c0_i32_0 = arith.constant 0 : i32
    return %arg0, %c0_i32 : i32, i32
  }
  func.func @transform_1(%arg0: i32) -> (i32, i32) {
    %c0_i32 = arith.constant 0 : i32
    %c0_i32_0 = arith.constant 0 : i32
    return %arg0, %c0_i32 : i32, i32
  }
  func.func @transform_2(%arg0: i32) -> (i32, i32) {
    %c0_i32 = arith.constant 0 : i32
    %c0_i32_0 = arith.constant 0 : i32
    return %arg0, %c0_i32 : i32, i32
  }
}

</mosaic_0001>

<bundles_post_ra>
// kernel: tpu_custom_call.1
= control target key start
LH: loop header
LB: loop body
LE: loop exit
PB: predicated region body
PF: predicated region fallthrough
CT: control target
= control target key end

     0   :  { %s373_s9 = smov 0   ;;  %s406_s0 = inlined_call_operand.vmem [shape: f32[48,128], index: 0, kind: input, shape index: {}]   ;;  %s407_s1 = inlined_call_operand.vmem [shape: s32[48,1], index: 1, kind: input, shape index: {}]   ;;  %s408_s2 = inlined_call_operand.vmem [shape: f32[48,1], index: 2, kind: output, shape index: {}]  }
   0x1 LB: > { %s316_s10 = sadd.s32 4294967295, %s355_s9   ;;  %p320_p0 = scmp.ge.s32.totalorder %s355_s9, 1  ;;  %s355_s9 = sphi %s373_s9, %s12_s9  }
   0x2   : > { %p124_p1 = scmp.lt.s32.totalorder %s355_s9, 4 }
   0x4   : > { %p125_p2 = pnand %p320_p0, %p124_p1 }
   0x5   : > { %s321_s11 = sshll.u32 (!%p125_p2), %s316_s10, 1  ;;  %s327_s19 = sshll.u32 (!%p125_p2), %s316_s10, 4 }
   0x6   : > { %128 = sbr.rel (%p125_p2) target bundleno = 345 (0x159), region = 28  ;;  %p152_p3 = scmp.lt.s32.totalorder (!%p125_p2), %s321_s11, 5 }
   0xb   : > { %v171_v0 = vlaneseq  ;;  %v357_v1 = vmov 0   ;;  %s410_s11 = smov (!%p152_p3, %s321_s11), 5  ;;  %v238_v37 = vstv %s327_s19  ;;  %vm245_vm4 = vcmask 7168  }
   0xc   : > { %339 = vset.pattern.permute.xlu1 %v357_v1  ;;  %340 = vset.pattern.permute.xlu0 %v357_v1  ;;  %s383_s12 = sshll.u32 %s410_s11, 3 }
   0xd   : > { %v172_v2 = vand.u32 127, %v171_v0  ;;  %s155_s15 = scalar_lea.vmem %s406_s0, %s383_s12  ;;  %s161_s18 = scalar_lea.vmem %s407_s1, %s383_s12  ;;  %v236_v33 = vshrl.u32 %v171_v0, 7 }
   0xe   : > { %v169_v3 = vld [vmem:[%s155_s15] sm:$0xff]  ;;  %v170_v4 = vld [vmem:[%s155_s15 + $0x8] sm:$0xff]  ;;  %s167_s22 = scalar_lea.vmem %s408_s2, %s383_s12 }
   0xf   : > { %vm173_vm0 = vcmp.lt.s32.totalorder %v172_v2, 32  ;;  %v200_v6 = vld [vmem:[%s161_s18] sm:$0xff]  ;;  %v201_v8 = vld [vmem:[%s161_s18 + $0x8] sm:$0xff]  ;;  %v239_v41 = vadd.s32 %v238_v37, %v236_v33  ;;  %v237_v42 = vadd.s32 8, %v236_v33 }
  0x10   : > { %v174_v5 = vsel %vm173_vm0, %v169_v3, -1e+30  ;;  %203 = vperm.xlu1 %339, %v200_v6   ;;  %v175_v7 = vsel %vm173_vm0, %v170_v4, -1e+30  ;;  %v176_v21 = vsel %vm173_vm0, %v169_v3, 0.0  ;;  %v177_v22 = vsel %vm173_vm0, %v170_v4, 0.0 }
  0x11   : > { %182 = vmax.xlane.f32.xlu0 %v174_v5  ;;  %vm241_vm3 = vcmp.lt.s32.totalorder %v239_v41, 40  ;;  %v240_v50 = vadd.s32 %v238_v37, %v237_v42 }
  0x13   : > { %vm242_vm5 = vcmp.lt.s32.totalorder %v240_v50, 40 }
  0x14   : > { %206 = vperm.xlu1 %339, %v201_v8  }
  0x15   : > { %184 = vmax.xlane.f32.xlu0 %v175_v7 }
  0x8b   : > { %v204_v15 = vpop.permute.xlu1 %203 }
  0x8c   : > { %vm208_vm1 = vcmp.eq.s32.totalorder %v172_v2, %v204_v15 }
  0x8d   : > { %v210_v18 = vsel %vm208_vm1, %v169_v3, 0.0 }
  0x8f   : > { %v207_v17 = vpop.permute.xlu1 %206 }
  0x90   : > { %vm209_vm2 = vcmp.eq.s32.totalorder %v172_v2, %v207_v17 }
  0x91   : > { %v211_v20 = vsel %vm209_vm2, %v170_v4, 0.0 }
  0x9a   : > { %v183_v9 = vpop.xlane.xlu0 %182 }
  0x9b   : > { %v186_v10 = vsub.f32 %v174_v5, %v183_v9 }
  0x9d   : > { %v188_v11 = vmul.f32 1.442695, %v186_v10 }
  0x9e   : > { %v185_v12 = vpop.xlane.xlu0 %184 }
  0x9f   : > { %341 = vpow2.f32 %v188_v11  ;;  %v187_v13 = vsub.f32 %v175_v7, %v185_v12 }
  0xa1   : > { %v190_v14 = vmul.f32 1.442695, %v187_v13 }
  0xa3   : > { %343 = vpow2.f32 %v190_v14 }
  0xac   : > { %v342_v16 = vpop.eup %341 }
  0xad   : > { %192 = vadd.xlane.f32.xlu0 %v342_v16 }
  0xb0   : > { %v344_v19 = vpop.eup %343 }
  0xb1   : > { %212 = vadd.xlane.f32.xlu0 %v210_v18  ;;  %194 = vadd.xlane.f32.xlu1 %v344_v19 }
  0xb5   : > { %214 = vadd.xlane.f32.xlu0 %v211_v20 }
  0xb9   : > { %178 = vadd.xlane.f32.xlu0 %v176_v21 }
  0xbd   : > { %180 = vadd.xlane.f32.xlu0 %v177_v22 }
 0x136   : > { %v193_v23 = vpop.xlane.xlu0 %192 }
 0x137   : > { %345 = vlog2.f32 %v193_v23 }
 0x13a   : > { %v195_v24 = vpop.xlane.xlu1 %194  ;;  %v213_v25 = vpop.xlane.xlu0 %212 }
 0x13b   : > { %347 = vlog2.f32 %v195_v24  ;;  %v222_v30 = vsub.f32 %v213_v25, %v183_v9 }
 0x13e   : > { %v215_v26 = vpop.xlane.xlu0 %214 }
 0x13f   : > { %v223_v38 = vsub.f32 %v215_v26, %v185_v12 }
 0x142   : > { %v179_v29 = vpop.xlane.xlu0 %178 }
 0x144   : > { %v346_v27 = vpop.eup %345 }
 0x145   : > { %v197_v28 = vmul.f32 0.6931472, %v346_v27 }
 0x146   : > { %v181_v43 = vpop.xlane.xlu0 %180 }
 0x147   : > { %v216_v31 = vadd.f32 %v197_v28, %v183_v9  ;;  %v224_v35 = vsub.f32 %v222_v30, %v197_v28 }
 0x148   : > { %v348_v32 = vpop.eup %347 }
 0x149   : > { %v199_v34 = vmul.f32 0.6931472, %v348_v32  ;;  %v218_v36 = vmul.f32 32.0, %v216_v31  ;;  %v228_v44 = vmul.f32 0.8967742, %v224_v35 }
 0x14b   : > { %v220_v39 = vsub.f32 %v179_v29, %v218_v36  ;;  %v217_v40 = vadd.f32 %v199_v34, %v185_v12  ;;  %v225_v45 = vsub.f32 %v223_v38, %v199_v34 }
 0x14d   : > { %v226_v46 = vmul.f32 0.0032258064, %v220_v39  ;;  %v219_v47 = vmul.f32 32.0, %v217_v40  ;;  %v229_v51 = vmul.f32 0.8967742, %v225_v45 }
 0x14f   : > { %v230_v48 = vadd.f32 %v228_v44, %v226_v46  ;;  %v221_v49 = vsub.f32 %v181_v43, %v219_v47 }
 0x151   : > { %v232_v52 = vsub.f32 0.0, %v230_v48  ;;  %v227_v53 = vmul.f32 0.0032258064, %v221_v49 }
 0x153   : > { %v243_v54 = vsel %vm241_vm3, %v232_v52, 0.0  ;;  %v231_v55 = vadd.f32 %v229_v51, %v227_v53 }
 0x154   : > { %246 = vst.msk [vmem:[%s167_s22] sm:$0xff] %vm245_vm4, %v243_v54 }
 0x155   : > { %v233_v56 = vsub.f32 0.0, %v231_v55 }
 0x157   : > { %v244_v57 = vsel %vm242_vm5, %v233_v56, 0.0 }
 0x158   : > { %247 = vst.msk [vmem:[%s167_s22 + $0x8] sm:$0xff] %vm245_vm4, %v244_v57 }
 0x159 PF: > { %s12_s9 = sadd.s32 1, %s355_s9  }
 0x15a   : > { %p9_p4 = scmp.ge.s32.totalorder %s12_s9, 5  }
 0x15c   :  { %11 = sbr.rel (!%p9_p4) target bundleno = 1 (0x1), region = 61 }

</bundles_post_ra>
